<compile_context>
chip_gen: v7x
topology: tpu7x:2x2x1
jax: 0.10.0
libtpu: 0.0.40
codegen_flags: <defaults>
</compile_context>

<pallas_src>
import jax
import jax.numpy as jnp
from jax import lax
from jax.experimental import pallas as pl
from jax.experimental.pallas import tpu as pltpu


def _round_up(x, m):
    return (x + m - 1) // m * m


def _pick_tiles(n, tile_cap=512):
    """Pick (n_pad, tm, tk): tiles are multiples of 128 that divide the padded size."""
    n_pad = _round_up(n, 128)
    t = 128
    for cand in (512, 384, 256, 128):
        if cand <= tile_cap and n_pad % cand == 0:
            t = cand
            break
    tk = t  # src / reduction tile
    tm = t  # dst tile
    # Give v7x's two TensorCores at least two dst tiles when the graph allows it.
    if n_pad // tm < 2 and n_pad >= 256 and (n_pad // 2) % 128 == 0:
        tm = n_pad // 2
    return n_pad, tm, tk


def gcn_kernel(a_ref, xt_ref, ndst_ref, b_ref, o_ref):
    """One (dst-tile i, src-tile k) step of O^T = ReLU((Xn^T @ A) * norm_dst + bias)."""
    k = pl.program_id(1)

    @pl.when(k == 0)
    def _():
        o_ref[...] = jnp.zeros_like(o_ref)

    # A tile arrives from HBM as int8 (exact for a 0/1 adjacency) and is up-converted
    # in-register to bf16 so the MXU runs the fast bf16 x bf16 path, accumulating in f32.
    a_bf16 = a_ref[...].astype(jnp.float32).astype(jnp.bfloat16)
    o_ref[...] += jnp.dot(xt_ref[...], a_bf16, preferred_element_type=jnp.float32)

    @pl.when(k == pl.num_programs(1) - 1)
    def _():
        h = o_ref[...] * ndst_ref[...] + b_ref[...]
        o_ref[...] = jnp.maximum(h, 0.0)  # activation = ReLU


def gcn_forward(adj, feats, bias, *, tile_cap=512):
    """ReLU(D_in^{-1/2} (A^T @ (D_out^{-1/2} X)) + bias).  adj must be a 0/1 adjacency."""
    n, f = feats.shape
    assert adj.shape == (n, n)

    # ---- wrapper-side preprocessing (fused XLA elementwise / reductions; no N^2 transpose) ----
    adj_f32 = adj.astype(jnp.float32)
    out_deg = jnp.maximum(jnp.sum(adj_f32, axis=1, keepdims=True), 1.0)   # (N, 1) src degree
    in_deg = jnp.maximum(jnp.sum(adj_f32, axis=0, keepdims=True), 1.0)    # (1, N) dst degree
    norm_src = lax.rsqrt(out_deg)                                         # (N, 1)
    norm_dst = lax.rsqrt(in_deg)                                          # (1, N)

    # Fold the src norm into the features once; bf16 for the bf16 MXU path; only the
    # small (N, F) matrix gets transposed here.
    xnT = (feats.astype(jnp.float32) * norm_src).astype(jnp.bfloat16).T   # (F, N)
    # NOTE: int8 storage is exact only for an unweighted 0/1 adjacency (true for this
    # module's DGL graph).  A weighted adjacency would need bf16/f32 here.
    adj_i8 = adj.astype(jnp.int8)                                         # (N_src, N_dst)

    n_pad, tm, tk = _pick_tiles(n, tile_cap)
    f_pad = _round_up(max(f, 128), 128)

    adj_i8 = jnp.pad(adj_i8, ((0, n_pad - n), (0, n_pad - n)))
    xnT = jnp.pad(xnT, ((0, f_pad - f), (0, n_pad - n)))
    norm_dst = jnp.pad(norm_dst, ((0, 0), (0, n_pad - n)))
    bias_col = jnp.pad(jnp.asarray(bias, jnp.float32).reshape(f, 1),
                       ((0, f_pad - f), (0, 0)))

    grid = (n_pad // tm, n_pad // tk)  # (dst tiles, src/reduction tiles) — reduction last

    out_t = pl.pallas_call(
        gcn_kernel,
        out_shape=jax.ShapeDtypeStruct((f_pad, n_pad), jnp.float32),
        grid_spec=pltpu.PrefetchScalarGridSpec(
            num_scalar_prefetch=0,
            grid=grid,
            in_specs=[
                pl.BlockSpec((tk, tm), lambda i, k: (k, i)),      # A tile (int8, untransposed)
                pl.BlockSpec((f_pad, tk), lambda i, k: (0, k)),   # Xn^T tile (bf16)
                pl.BlockSpec((1, tm), lambda i, k: (0, i)),       # dst norm row (resident per i)
                pl.BlockSpec((f_pad, 1), lambda i, k: (0, 0)),    # bias column (resident)
            ],
            out_specs=pl.BlockSpec((f_pad, tm), lambda i, k: (0, i)),
        ),
        compiler_params=pltpu.CompilerParams(
            dimension_semantics=("parallel", "arbitrary"),
            vmem_limit_bytes=32 * 1024 * 1024,
        ),
    )(adj_i8, xnT, norm_dst, bias_col)

    # Small (F, N) -> (N, F) transpose; negligible vs the N^2 streams.
    return out_t[:f, :n].T


def gcn_reference(adj, feats, bias):
    out_deg = jnp.maximum(adj.sum(axis=1, keepdims=True), 1.0)
    in_deg = jnp.maximum(adj.sum(axis=0, keepdims=True).T, 1.0)
    h = (adj.T @ (feats * lax.rsqrt(out_deg))) * lax.rsqrt(in_deg) + bias.reshape(1, -1)
    return jnp.maximum(h, 0.0)


if __name__ == "__main__":
    # small shapes: graph with 64 nodes, in_feats = n_hidden = 32
    N, F = 64, 32
    key = jax.random.PRNGKey(0)
    k_adj, k_x, k_b = jax.random.split(key, 3)

    # dense 0/1 adjacency (directed), deterministic
    adj = jax.random.bernoulli(k_adj, p=0.2, shape=(N, N)).astype(jnp.float32)
    feats = jax.random.normal(k_x, (N, F), dtype=jnp.float32)
    # GraphConv bias parameter (n_hidden,), deterministic init
    bias = 0.01 * jax.random.normal(k_b, (F,), dtype=jnp.float32)

    out = gcn_forward(adj, feats, bias)
    jax.block_until_ready(out)

    ref = gcn_reference(adj, feats, bias)
    assert out.shape == (N, F)
    # bf16 feature path (f32 accumulate) vs full-f32 reference -> relaxed tolerance.
    assert jnp.allclose(out, ref, atol=2e-2, rtol=2e-2), float(jnp.max(jnp.abs(out - ref)))

    print("KERNEL_OK")
</pallas_src>

<mosaic_0001>
module attributes {stable_mosaic.version = 11 : i64} {
  func.func @gcn_kernel(%arg0: i32, %arg1: i32, %arg2: memref<128x128xi8, #tpu.memory_space<vmem>>, %arg3: memref<128x128xbf16, #tpu.memory_space<vmem>>, %arg4: memref<1x128xf32, #tpu.memory_space<vmem>>, %arg5: memref<128x1xf32, #tpu.memory_space<vmem>>, %arg6: memref<128x128xf32, #tpu.memory_space<vmem>>) attributes {dimension_semantics = [#tpu.dimension_semantics<parallel>, #tpu.dimension_semantics<arbitrary>], iteration_bounds = array<i64: 1, 1>, scalar_prefetch = 0 : i64, scratch_operands = 0 : i64, tpu.core_type = #tpu.core_type<tc>, window_params = [{transform_indices = @transform_0, window_bounds = array<i64: 128, 128>}, {transform_indices = @transform_1, window_bounds = array<i64: 128, 128>}, {transform_indices = @transform_2, window_bounds = array<i64: 1, 128>}, {pipeline_mode = #tpu.pipeline_mode<synchronous>, transform_indices = @transform_3, window_bounds = array<i64: 128, 1>}, {transform_indices = @transform_4, window_bounds = array<i64: 128, 128>}]} {
    %c0_i32 = arith.constant 0 : i32
    %0 = arith.cmpi eq, %arg1, %c0_i32 : i32
    %1 = arith.extui %0 : i1 to i32
    %c0_i32_0 = arith.constant 0 : i32
    %2 = arith.cmpi ne, %1, %c0_i32_0 : i32
    scf.if %2 {
      %cst_10 = arith.constant 0.000000e+00 : f32
      %14 = vector.broadcast %cst_10 : f32 to vector<128x128xf32>
      %c0_11 = arith.constant 0 : index
      %c0_12 = arith.constant 0 : index
      %15 = vector.load %arg6[%c0_11, %c0_12] : memref<128x128xf32, #tpu.memory_space<vmem>>, vector<128x128xf32>
      tpu.vector_store %arg6[%c0_11, %c0_12], %14 {strides = array<i32>} : memref<128x128xf32, #tpu.memory_space<vmem>>, vector<128x128xf32>,
    } else {
    }
    %c0 = arith.constant 0 : index
    %c0_1 = arith.constant 0 : index
    %3 = vector.load %arg2[%c0, %c0_1] : memref<128x128xi8, #tpu.memory_space<vmem>>, vector<128x128xi8>
    %4 = arith.sitofp %3 : vector<128x128xi8> to vector<128x128xf32>
    %5 = arith.truncf %4 : vector<128x128xf32> to vector<128x128xbf16>
    %c0_2 = arith.constant 0 : index
    %c0_3 = arith.constant 0 : index
    %6 = vector.load %arg6[%c0_2, %c0_3] : memref<128x128xf32, #tpu.memory_space<vmem>>, vector<128x128xf32>
    %c0_4 = arith.constant 0 : index
    %c0_5 = arith.constant 0 : index
    %7 = vector.load %arg3[%c0_4, %c0_5] : memref<128x128xbf16, #tpu.memory_space<vmem>>, vector<128x128xbf16>
    %cst = arith.constant dense<0.000000e+00> : vector<128x128xf32>
    %8 = tpu.matmul %7, %5, %cst {dimension_numbers = #tpu.dot_dimension_numbers<[1], [0], [0], [1], [0, 0, 1, 1], [], []>} : vector<128x128xbf16>, vector<128x128xbf16>, vector<128x128xf32> -> vector<128x128xf32>
    %9 = arith.addf %6, %8 : vector<128x128xf32>
    %c0_6 = arith.constant 0 : index
    %c0_7 = arith.constant 0 : index
    %10 = vector.load %arg6[%c0_6, %c0_7] : memref<128x128xf32, #tpu.memory_space<vmem>>, vector<128x128xf32>
    tpu.vector_store %arg6[%c0_6, %c0_7], %9 {strides = array<i32>} : memref<128x128xf32, #tpu.memory_space<vmem>>, vector<128x128xf32>,
    %c0_i32_8 = arith.constant 0 : i32
    %11 = arith.cmpi eq, %arg1, %c0_i32_8 : i32
    %12 = arith.extui %11 : i1 to i32
    %c0_i32_9 = arith.constant 0 : i32
    %13 = arith.cmpi ne, %12, %c0_i32_9 : i32
    scf.if %13 {
      %c0_10 = arith.constant 0 : index
      %c0_11 = arith.constant 0 : index
      %14 = vector.load %arg6[%c0_10, %c0_11] : memref<128x128xf32, #tpu.memory_space<vmem>>, vector<128x128xf32>
      %c0_12 = arith.constant 0 : index
      %c0_13 = arith.constant 0 : index
      %15 = vector.load %arg4[%c0_12, %c0_13] : memref<1x128xf32, #tpu.memory_space<vmem>>, vector<1x128xf32>
      %16 = vector.broadcast %15 : vector<1x128xf32> to vector<128x128xf32>
      %17 = arith.mulf %14, %16 : vector<128x128xf32>
      %c0_14 = arith.constant 0 : index
      %c0_15 = arith.constant 0 : index
      %18 = vector.load %arg5[%c0_14, %c0_15] : memref<128x1xf32, #tpu.memory_space<vmem>>, vector<128x1xf32>
      %19 = vector.broadcast %18 : vector<128x1xf32> to vector<128x128xf32>
      %20 = arith.addf %17, %19 : vector<128x128xf32>
      %cst_16 = arith.constant 0.000000e+00 : f32
      %21 = vector.broadcast %cst_16 : f32 to vector<128x128xf32>
      %22 = arith.maximumf %20, %21 : vector<128x128xf32>
      %c0_17 = arith.constant 0 : index
      %c0_18 = arith.constant 0 : index
      %23 = vector.load %arg6[%c0_17, %c0_18] : memref<128x128xf32, #tpu.memory_space<vmem>>, vector<128x128xf32>
      tpu.vector_store %arg6[%c0_17, %c0_18], %22 {strides = array<i32>} : memref<128x128xf32, #tpu.memory_space<vmem>>, vector<128x128xf32>,
    } else {
    }
    return
  }
  func.func @transform_0(%arg0: i32, %arg1: i32) -> (i32, i32) {
    %c0_i32 = arith.constant 0 : i32
    return %arg1, %arg0 : i32, i32
  }
  func.func @transform_1(%arg0: i32, %arg1: i32) -> (i32, i32) {
    %c0_i32 = arith.constant 0 : i32
    %c0_i32_0 = arith.constant 0 : i32
    return %c0_i32, %arg1 : i32, i32
  }
  func.func @transform_2(%arg0: i32, %arg1: i32) -> (i32, i32) {
    %c0_i32 = arith.constant 0 : i32
    %c0_i32_0 = arith.constant 0 : i32
    return %c0_i32, %arg0 : i32, i32
  }
  func.func @transform_3(%arg0: i32, %arg1: i32) -> (i32, i32) {
    %c0_i32 = arith.constant 0 : i32
    %c0_i32_0 = arith.constant 0 : i32
    %c0_i32_1 = arith.constant 0 : i32
    return %c0_i32, %c0_i32_0 : i32, i32
  }
  func.func @transform_4(%arg0: i32, %arg1: i32) -> (i32, i32) {
    %c0_i32 = arith.constant 0 : i32
    %c0_i32_0 = arith.constant 0 : i32
    return %c0_i32, %arg0 : i32, i32
  }
}

</mosaic_0001>

<bundles_post_ra>
// kernel: tpu_custom_call.1
= control target key start
LH: loop header
LB: loop body
LE: loop exit
PB: predicated region body
PF: predicated region fallthrough
CT: control target
= control target key end

     0   :  { %v574_v4 = vmov 0   ;;  %s729_s0 = inlined_call_operand.vmem [shape: s8[128,128], index: 0, kind: input, shape index: {}]   ;;  %s730_s1 = inlined_call_operand.vmem [shape: bf16[128,128], index: 1, kind: input, shape index: {}]   ;;  %s731_s2 = inlined_call_operand.vmem [shape: f32[1,128], index: 2, kind: input, shape index: {}]   ;;  %s732_s3 = inlined_call_operand.vmem [shape: f32[128,1], index: 3, kind: input, shape index: {}]   ;;  %s733_s4 = inlined_call_operand.hbm [shape: f32[128,128], index: 4, kind: output, shape index: {}]  }
   0x1   :  { %v39_v0 = vld [vmem:[%s729_s0] sm:$0xff]  ;;  %v40_v3 = vld [vmem:[%s729_s0 + $0x8] sm:$0xff]  ;;  %541 = vset.pattern.permute.xlu1 %v574_v4  ;;  %540 = vset.pattern.permute.xlu0 %v574_v4  ;;  %v304_v9 = vld [vmem:[%s732_s3 + $0x10] sm:$0xff] }
   0x2   :  { %v43_v1 = vunpack.c.l.s8.bf16 %v39_v0  ;;  %v44_v2 = vunpack.c.h.s8.bf16 %v39_v0  ;;  %v542_v5 = vld [vmem:[%s730_s1] sm:$0xff]   ;;  %v45_v7 = vunpack.c.l.s8.bf16 %v40_v3  ;;  %v46_v8 = vunpack.c.h.s8.bf16 %v40_v3  ;;  %v41_v11 = vld [vmem:[%s729_s0 + $0x10] sm:$0xff]  ;;  %330 = vperm.xlu1 %541, %v304_v9   ;;  %v305_v12 = vld [vmem:[%s732_s3 + $0x18] sm:$0xff] }
   0x3   :  { %v543_v6 = vld [vmem:[%s730_s1 + $0x20] sm:$0xff]   ;;  %503 = vmatprep.mubr.bf16.mxu0 %v542_v5  ;;  %v303_v13 = vld [vmem:[%s732_s3 + $0x8] sm:$0xff]  ;;  %v47_v14 = vunpack.c.l.s8.bf16 %v41_v11 }
   0x4   :  { %487 = vmatprep.subr.bf16.mxu0 %v43_v1  ;;  %519 = vmatprep.subr.bf16.mxu1 %v43_v1  ;;  %v302_v10 = vld [vmem:[%s732_s3] sm:$0xff] }
   0x5   :  { %488 = vmatpush3.bf16.msra.mxu0 %v43_v1  ;;  %527 = vmatpush3.bf16.msra.mxu1 %v43_v1 }
   0x6   :  { %489 = vmatprep.subr.bf16.mxu0 %v44_v2  ;;  %520 = vmatprep.subr.bf16.mxu1 %v44_v2 }
   0x7   :  { %511 = vmatprep.mubr.bf16.mxu1 %v543_v6  ;;  %320 = vperm.xlu0 %540, %v302_v10  }
   0x8   :  { %335 = vperm.xlu1 %541, %v305_v12  }
   0x9   :  { %490 = vmatpush3.bf16.msra.mxu0 %v44_v2  ;;  %528 = vmatpush3.bf16.msra.mxu1 %v44_v2 }
   0xa   :  { %491 = vmatprep.subr.bf16.mxu0 %v45_v7  ;;  %521 = vmatprep.subr.bf16.mxu1 %v45_v7 }
   0xb   :  { %325 = vperm.xlu0 %540, %v303_v13  }
   0xd   :  { %492 = vmatpush3.bf16.msra.mxu0 %v45_v7  ;;  %529 = vmatpush3.bf16.msra.mxu1 %v45_v7 }
   0xe   :  { %493 = vmatprep.subr.bf16.mxu0 %v46_v8  ;;  %522 = vmatprep.subr.bf16.mxu1 %v46_v8 }
   0xf   :  { %9 = vsyncpa [#allocation3], 0  ;;  %v307_v15 = vld [vmem:[%s732_s3 + $0x28] sm:$0xff]  ;;  %v306_v16 = vld [vmem:[%s732_s3 + $0x20] sm:$0xff]  ;;  %v48_v17 = vunpack.c.h.s8.bf16 %v41_v11 }
  0x10   :  { %v42_v18 = vld [vmem:[%s729_s0 + $0x18] sm:$0xff]  ;;  %345 = vperm.xlu1 %541, %v307_v15   ;;  %340 = vperm.xlu0 %540, %v306_v16   ;;  %v308_v20 = vld [vmem:[%s732_s3 + $0x30] sm:$0xff]  ;;  %v311_v22 = vld [vmem:[%s732_s3 + $0x48] sm:$0xff] }
  0x11   :  { %494 = vmatpush3.bf16.msra.mxu0 %v46_v8  ;;  %530 = vmatpush3.bf16.msra.mxu1 %v46_v8  ;;  %v309_v19 = vld [vmem:[%s732_s3 + $0x38] sm:$0xff]  ;;  %v49_v21 = vunpack.c.l.s8.bf16 %v42_v18  ;;  %v310_v23 = vld [vmem:[%s732_s3 + $0x40] sm:$0xff]  ;;  %v50_v24 = vunpack.c.h.s8.bf16 %v42_v18  ;;  %v312_v26 = vld [vmem:[%s732_s3 + $0x50] sm:$0xff] }
  0x12   :  { %495 = vmatprep.subr.bf16.mxu0 %v47_v14  ;;  %523 = vmatprep.subr.bf16.mxu1 %v47_v14  ;;  %v313_v25 = vld [vmem:[%s732_s3 + $0x58] sm:$0xff]  ;;  %v544_v27 = vld [vmem:[%s730_s1 + $0x8] sm:$0xff]   ;;  %v314_v30 = vld [vmem:[%s732_s3 + $0x60] sm:$0xff] }
  0x13   :  { %v545_v28 = vld [vmem:[%s730_s1 + $0x28] sm:$0xff]   ;;  %v546_v31 = vld [vmem:[%s730_s1 + $0x10] sm:$0xff]   ;;  %v317_v33 = vld [vmem:[%s732_s3 + $0x78] sm:$0xff] }
  0x14   :  { %355 = vperm.xlu1 %541, %v309_v19   ;;  %350 = vperm.xlu0 %540, %v308_v20   ;;  %v315_v29 = vld [vmem:[%s732_s3 + $0x68] sm:$0xff]  ;;  %v547_v32 = vld [vmem:[%s730_s1 + $0x30] sm:$0xff]   ;;  %v548_v35 = vld [vmem:[%s730_s1 + $0x18] sm:$0xff]  }
  0x15   :  { %496 = vmatpush3.bf16.msra.mxu0 %v47_v14  ;;  %531 = vmatpush3.bf16.msra.mxu1 %v47_v14  ;;  %v316_v34 = vld [vmem:[%s732_s3 + $0x70] sm:$0xff]  ;;  %v549_v36 = vld [vmem:[%s730_s1 + $0x38] sm:$0xff]   ;;  %v696_v50 = vld [vmem:[%s731_s2] ss:$0 sm:$0xff]  ;;  %s575_s2 = smov [#allocation2]  }
  0x16   :  { %497 = vmatprep.subr.bf16.mxu0 %v48_v17  ;;  %524 = vmatprep.subr.bf16.mxu1 %v48_v17  ;;  %s451_s18 = sshll.u32 %s575_s2, 4  ;;  %s452_s18 = int_to_ptr.vmem [resolvable:$true] %s451_s18 }
  0x17   :  { %s550_s0 = scalar_lea.vmem %s452_s18, 2048  ;;  %p555_p1 = scmp.lt.s32.totalorder %s452_s18, %s452_s18 }
  0x18   :  { %365 = vperm.xlu1 %541, %v311_v22   ;;  %360 = vperm.xlu0 %540, %v310_v23   ;;  %p551_p0 = scmp.ne.s32.totalorder %s452_s18, %s550_s0  ;;  %p556_p2 = scmp.lt.s32.totalorder %s550_s0, %s550_s0 }
  0x19   :  { %498 = vmatpush3.bf16.msra.mxu0 %v48_v17  ;;  %532 = vmatpush3.bf16.msra.mxu1 %v48_v17 }
  0x1a   :  { %499 = vmatprep.subr.bf16.mxu0 %v49_v21  ;;  %525 = vmatprep.subr.bf16.mxu1 %v49_v21  ;;  %p557_p3 = por %p556_p2, %p555_p1 }
  0x1c   :  { %375 = vperm.xlu1 %541, %v313_v25   ;;  %370 = vperm.xlu0 %540, %v312_v26   ;;  %p558_p4 = pnand %p557_p3, %p551_p0 }
  0x1d   :  { %500 = vmatpush3.bf16.msra.mxu0 %v49_v21  ;;  %533 = vmatpush3.bf16.msra.mxu1 %v49_v21 }
  0x1e   :  { %501 = vmatprep.subr.bf16.mxu0 %v50_v24  ;;  %526 = vmatprep.subr.bf16.mxu1 %v50_v24 }
  0x20   :  { %385 = vperm.xlu1 %541, %v315_v29   ;;  %380 = vperm.xlu0 %540, %v314_v30  }
  0x21   :  { %502 = vmatpush3.bf16.msra.mxu0 %v50_v24  ;;  %534 = vmatpush3.bf16.msra.mxu1 %v50_v24 }
  0x24   :  { %504 = vmatmul.mubr.bf16.vlgmr.msra.gmra.mrb[0].mxu0 %v544_v27  ;;  %512 = vmatmul.mubr.bf16.vlgmr.msra.gmra.mrb[0].mxu1 %v545_v28 }
  0x25   :  { %507 = vmatprep.mubr.bf16.mxu0 %v546_v31  ;;  %515 = vmatprep.mubr.bf16.mxu1 %v547_v32 }
  0x26   :  { %395 = vperm.xlu1 %541, %v317_v33   ;;  %390 = vperm.xlu0 %540, %v316_v34  }
  0x2c   :  { %508 = vmatmul.mubr.bf16.gmra.mrb[4].mxu0 %v548_v35  ;;  %516 = vmatmul.mubr.bf16.gmra.mrb[4].mxu1 %v549_v36 }
  0x81   :  { %v331_v37 = vpop.permute.xlu1 %330 }
  0x86   :  { %v321_v38 = vpop.permute.xlu0 %320 }
  0x87   :  { %v336_v39 = vpop.permute.xlu1 %335 }
  0x8a   :  { %v326_v40 = vpop.permute.xlu0 %325 }
  0x8f   :  { %v687_v41 = vpop.permute.xlu1 %345  ;;  %v689_v42 = vpop.permute.xlu0 %340 }
  0x93   :  { %v691_v43 = vpop.permute.xlu1 %355  ;;  %v351_v44 = vpop.permute.xlu0 %350 }
  0x97   :  { %v366_v45 = vpop.permute.xlu1 %365  ;;  %v361_v46 = vpop.permute.xlu0 %360 }
  0x9b   :  { %v376_v47 = vpop.permute.xlu1 %375  ;;  %v371_v48 = vpop.permute.xlu0 %370 }
  0x9f   :  { %v381_v2 = vpop.permute.xlu0 %380  ;;  %v386_v7 = vpop.permute.xlu1 %385 }
  0xa5   :  { %v391_v30 = vpop.permute.xlu0 %390 }
  0xf7   :  { %v505_v49 = vpop.f32.mrb[0].mxu0  ;;  %v513_v51 = vpop.f32.mrb[0].mxu1 }
  0xf8   :  { %v165_v52 = vpop.f32.mrb[1].mxu0  ;;  %v197_v53 = vpop.f32.mrb[1].mxu1  ;;  %v288_v56 = vmul.f32 %v505_v49, %v696_v50  ;;  %v296_v57 = vmul.f32 %v513_v51, %v696_v50 }
  0xf9   :  { %v506_v54 = vpop.f32.mrb[2].mxu0  ;;  %v514_v55 = vpop.f32.mrb[2].mxu1  ;;  %v286_v60 = vmul.f32 %v696_v50, %v165_v52  ;;  %v294_v61 = vmul.f32 %v696_v50, %v197_v53 }
  0xfa   :  { %v168_v58 = vpop.f32.mrb[3].mxu0  ;;  %v200_v59 = vpop.f32.mrb[3].mxu1  ;;  %v400_v62 = vadd.f32 %v331_v37, %v288_v56  ;;  %v408_v63 = vadd.f32 %v371_v48, %v296_v57  ;;  %v289_v0 = vmul.f32 %v506_v54, %v696_v50  ;;  %v297_v1 = vmul.f32 %v514_v55, %v696_v50 }
  0xfb   :  { %v398_v3 = vadd.f32 %v321_v38, %v286_v60  ;;  %v406_v4 = vadd.f32 %v361_v46, %v294_v61  ;;  %v287_v5 = vmul.f32 %v696_v50, %v168_v58  ;;  %v295_v6 = vmul.f32 %v696_v50, %v200_v59  ;;  %v396_v37 = vpop.permute.xlu1 %395 }
  0xfc   :  { %v416_v8 = vmax.f32 %v400_v62, 0.0  ;;  %v424_v9 = vmax.f32 %v408_v63, 0.0  ;;  %v401_v10 = vadd.f32 %v336_v39, %v289_v0  ;;  %v409_v11 = vadd.f32 %v376_v47, %v297_v1 }
  0xfd   :  { %v414_v12 = vmax.f32 %v398_v3, 0.0  ;;  %v422_v13 = vmax.f32 %v406_v4, 0.0  ;;  %v399_v14 = vadd.f32 %v326_v40, %v287_v5  ;;  %v407_v15 = vadd.f32 %v366_v45, %v295_v6 }
  0xfe   :  { %432 = vst [vmem:[#allocation2 + $0x10] sm:$0xff] %v416_v8  ;;  %440 = vst [vmem:[#allocation2 + $0x50] sm:$0xff] %v424_v9  ;;  %v417_v18 = vmax.f32 %v401_v10, 0.0  ;;  %v425_v19 = vmax.f32 %v409_v11, 0.0 }
  0xff   :  { %v509_v16 = vpop.f32.mrb[4].mxu0  ;;  %v517_v17 = vpop.f32.mrb[4].mxu1  ;;  %430 = vst [vmem:[#allocation2] sm:$0xff] %v414_v12  ;;  %438 = vst [vmem:[#allocation2 + $0x40] sm:$0xff] %v422_v13  ;;  %v415_v22 = vmax.f32 %v399_v14, 0.0  ;;  %v423_v23 = vmax.f32 %v407_v15, 0.0 }
 0x100   :  { %v181_v20 = vpop.f32.mrb[5].mxu0  ;;  %v213_v21 = vpop.f32.mrb[5].mxu1  ;;  %433 = vst [vmem:[#allocation2 + $0x18] sm:$0xff] %v417_v18  ;;  %441 = vst [vmem:[#allocation2 + $0x58] sm:$0xff] %v425_v19  ;;  %v292_v26 = vmul.f32 %v509_v16, %v696_v50  ;;  %v300_v27 = vmul.f32 %v517_v17, %v696_v50 }
 0x101   :  { %v510_v24 = vpop.f32.mrb[6].mxu0  ;;  %v518_v25 = vpop.f32.mrb[6].mxu1  ;;  %431 = vst [vmem:[#allocation2 + $0x8] sm:$0xff] %v415_v22  ;;  %439 = vst [vmem:[#allocation2 + $0x48] sm:$0xff] %v423_v23  ;;  %v290_v31 = vmul.f32 %v696_v50, %v181_v20  ;;  %v298_v32 = vmul.f32 %v696_v50, %v213_v21 }
 0x102   :  { %v184_v28 = vpop.f32.mrb[7].mxu0  ;;  %v216_v29 = vpop.f32.mrb[7].mxu1  ;;  %v404_v33 = vadd.f32 %v351_v44, %v292_v26  ;;  %v412_v34 = vadd.f32 %v391_v30, %v300_v27  ;;  %v293_v35 = vmul.f32 %v510_v24, %v696_v50  ;;  %v301_v36 = vmul.f32 %v518_v25, %v696_v50 }
 0x103   :  { %v402_v38 = vadd.f32 %v689_v42, %v290_v31  ;;  %v410_v39 = vadd.f32 %v381_v2, %v298_v32  ;;  %v291_v40 = vmul.f32 %v696_v50, %v184_v28  ;;  %v299_v45 = vmul.f32 %v696_v50, %v216_v29 }
 0x104   :  { %v420_v46 = vmax.f32 %v404_v33, 0.0  ;;  %v428_v47 = vmax.f32 %v412_v34, 0.0  ;;  %v405_v48 = vadd.f32 %v691_v43, %v293_v35  ;;  %v413_v44 = vadd.f32 %v396_v37, %v301_v36 }
 0x105   :  { %v418_v49 = vmax.f32 %v402_v38, 0.0  ;;  %v426_v51 = vmax.f32 %v410_v39, 0.0  ;;  %v403_v52 = vadd.f32 %v687_v41, %v291_v40  ;;  %v411_v53 = vadd.f32 %v386_v7, %v299_v45 }
 0x106   :  { %436 = vst [vmem:[#allocation2 + $0x30] sm:$0xff] %v420_v46  ;;  %444 = vst [vmem:[#allocation2 + $0x70] sm:$0xff] %v428_v47  ;;  %v421_v42 = vmax.f32 %v405_v48, 0.0  ;;  %v429_v54 = vmax.f32 %v413_v44, 0.0 }
 0x107   :  { %434 = vst [vmem:[#allocation2 + $0x20] sm:$0xff] %v418_v49  ;;  %442 = vst [vmem:[#allocation2 + $0x60] sm:$0xff] %v426_v51  ;;  %v419_v50 = vmax.f32 %v403_v52, 0.0  ;;  %v427_v55 = vmax.f32 %v411_v53, 0.0 }
 0x108   :  { %437 = vst [vmem:[#allocation2 + $0x38] sm:$0xff] %v421_v42  ;;  %445 = vst [vmem:[#allocation2 + $0x78] sm:$0xff] %v429_v54 }
 0x109   :  { %435 = vst [vmem:[#allocation2 + $0x28] sm:$0xff] %v419_v50  ;;  %443 = vst [vmem:[#allocation2 + $0x68] sm:$0xff] %v427_v55 }
 0x10a   :  { %561 = shalt.err (!%p558_p4)
}
 0x10b   :  { %s562_s21 = scalar_lea.hbm %s733_s4, 2048 }
 0x10c   :  { %p563_p5 = scmp.ne.s32.totalorder %s733_s4, %s562_s21  ;;  %p566_p6 = scmp.lt.u32.totalorder %s562_s21, %s733_s4 }
 0x10e   :  { %p568_p7 = pnand %p566_p6, %p563_p5 }
 0x110   :  { %571 = shalt.err (!%p568_p7)
}
 0x111   :  { %s576_s26 = smov 128   ;;  %s577_s27 = smov 8  }
 0x112   :  { %457 = dma.vmem_to_hbm [thread:$0]  %s452_s18, 2048, %s733_s4, [#allocation3], %s576_s26, %s576_s26, %s577_s27  }
 0x113   :  { %572 = dma.done.wait [#allocation3], 2048  }
 0x114   :  { %573 = vsyncadd [#allocation3], 4294965248 }
 0x115   :  { %461 = vsyncpa [#allocation3], 1 }

</bundles_post_ra>
